<compile_context>
chip_gen: v7x
topology: tpu7x:2x2x1
jax: 0.10.0
libtpu: 0.0.40
codegen_flags: <defaults>
</compile_context>

<pallas_src>
import jax
import jax.numpy as jnp
from jax.experimental import pallas as pl
from jax.experimental.pallas import tpu as pltpu

LANES = 128
MAX_TILE_ROWS = 8192          # 4 MiB (f32) per input tile per grid step
VMEM_LIMIT_BYTES = 48 << 20   # 24 MiB of double-buffered inputs + temps; < 64 MiB (v7x)
SMALL_INPUT_ELEMS = 1024      # below this, pure-jnp beats kernel launch overhead
                              # (a production deployment would raise this to ~256K-1M)


def _make_kernel():
    def kernel(x_ref, y_ref, m_ref, gout_ref, lout_ref, acc_g, acc_l):
        i = pl.program_id(1)

        @pl.when(i == 0)
        def _init():
            acc_g[...] = jnp.zeros_like(acc_g)
            acc_l[...] = jnp.zeros_like(acc_l)

        # Upcast inside the kernel: bf16 inputs then only pay half the HBM
        # traffic compared with a wrapper-side cast.
        x = x_ref[...].astype(jnp.float32)
        y = y_ref[...].astype(jnp.float32)
        m = m_ref[...].astype(jnp.float32)

        d = jnp.abs(x - y)           # global term
        dl = jnp.abs(m) * d          # local term: |x*m - y*m| == |m| * |x - y|

        # Lane-wise accumulation: regroup into whole (8,128) vregs so the
        # per-step reduce stays on the VPU (elementwise vreg adds only).
        acc_g[...] += d.reshape(-1, 8, LANES).sum(axis=0)
        acc_l[...] += dl.reshape(-1, 8, LANES).sum(axis=0)

        @pl.when(i == pl.num_programs(1) - 1)
        def _flush():
            # One cross-sublane reduce per partial block; outputs stay lane-dense.
            gout_ref[...] = jnp.sum(acc_g[...], axis=0, keepdims=True)
            lout_ref[...] = jnp.sum(acc_l[...], axis=0, keepdims=True)

    return kernel


def _sublane_multiple(*dtypes):
    """Row-count multiple that keeps blocks aligned with packed-vreg tiling."""
    itemsize = min(jnp.dtype(d).itemsize for d in dtypes)
    return 8 * max(1, 4 // max(1, itemsize))   # 8 (f32) / 16 (bf16) / 32 (i8/fp8)


def _num_tensorcores():
    """2 on v7x (megacore sharding is worth an outer 'parallel' axis), else 1."""
    try:
        kind = jax.devices()[0].device_kind.lower()
    except Exception:  # pragma: no cover - defensive; default to single-core
        return 1
    return 2 if "v7" in kind else 1


def _partial_sums_pallas(x2, y2, m2, n_tiles, tile_rows, n_part):
    """Sum |x-y| and |m|*|x-y| over the first n_tiles*tile_rows rows of (rows,128)."""
    inner = n_tiles // n_part      # exact: n_part divides n_tiles by construction
    kernel = _make_kernel()

    in_spec = pl.BlockSpec((tile_rows, LANES), lambda p, i: (p * inner + i, 0))
    out_spec = pl.BlockSpec((1, LANES), lambda p, i: (p, 0))

    elems = n_tiles * tile_rows * LANES
    in_bytes = elems * (x2.dtype.itemsize + y2.dtype.itemsize + m2.dtype.itemsize)
    cost = pl.CostEstimate(
        flops=6 * elems,
        transcendentals=0,
        bytes_accessed=in_bytes + 2 * n_part * LANES * 4,
    )

    gpart, lpart = pl.pallas_call(
        kernel,
        out_shape=(
            jax.ShapeDtypeStruct((n_part, LANES), jnp.float32),
            jax.ShapeDtypeStruct((n_part, LANES), jnp.float32),
        ),
        grid_spec=pltpu.PrefetchScalarGridSpec(
            num_scalar_prefetch=0,
            grid=(n_part, inner),
            in_specs=[in_spec, in_spec, in_spec],
            out_specs=(out_spec, out_spec),
            scratch_shapes=[
                pltpu.VMEM((8, LANES), jnp.float32),
                pltpu.VMEM((8, LANES), jnp.float32),
            ],
        ),
        compiler_params=pltpu.CompilerParams(
            dimension_semantics=("parallel", "arbitrary"),
            vmem_limit_bytes=VMEM_LIMIT_BYTES,
        ),
        cost_estimate=cost,
    )(x2, y2, m2)

    return jnp.sum(gpart), jnp.sum(lpart)


@jax.jit
def global_local_l1_loss(inp, gt, mask):
    """Pallas implementation of Global_Local_L1Loss.forward (scalar float32)."""
    n_elem = inp.size

    # Mirror PyTorch broadcasting of `input * mask` (no-op when shapes match).
    # TODO(synk): for mismatched shapes (e.g. (N,1,H,W) inpainting masks),
    # implement the broadcast via a dedicated mask BlockSpec/index_map instead
    # of materializing a full-size mask in HBM.
    if mask.shape != inp.shape:
        mask = jnp.broadcast_to(mask, inp.shape)

    xf = inp.reshape(-1)
    yf = gt.reshape(-1)
    mf = mask.reshape(-1)

    def _sums_from(start):
        # Pure-JAX partial sums over the flat tail starting at `start`.
        xt = xf[start:].astype(jnp.float32)
        yt = yf[start:].astype(jnp.float32)
        mt = mf[start:].astype(jnp.float32)
        dt = jnp.abs(xt - yt)
        return jnp.sum(dt), jnp.sum(jnp.abs(mt) * dt)

    rows = n_elem // LANES
    sub = _sublane_multiple(inp.dtype, gt.dtype, mask.dtype)

    # Small-input fast path: kernel launch + pipeline fill dwarfs the reduction.
    if n_elem < SMALL_INPUT_ELEMS or rows < sub:
        g_sum, l_sum = _sums_from(0)
        return (g_sum + l_sum) / jnp.float32(n_elem)

    tile_rows = min(MAX_TILE_ROWS, (rows // sub) * sub)
    n_tiles = rows // tile_rows
    n_covered = n_tiles * tile_rows * LANES

    # Outer 'parallel' partials axis sized to the real TensorCore count, and
    # only when it divides n_tiles so no clamped/duplicated DMA steps exist.
    n_part = 2 if (_num_tensorcores() == 2 and n_tiles % 2 == 0) else 1

    if n_elem % LANES == 0:
        # Free reshape of the whole contiguous array; the grid only visits the
        # first n_tiles full tiles, so no copy and no in-kernel masking needed.
        x2 = xf.reshape(rows, LANES)
        y2 = yf.reshape(rows, LANES)
        m2 = mf.reshape(rows, LANES)
    else:
        # Rare: numel not a multiple of 128.  Prefix slice (a copy); the sub-128
        # remainder is folded into the pure-JAX tail below.
        # TODO(synk): avoid the copy with a 1-D BlockSpec over the flat array.
        x2 = xf[: rows * LANES].reshape(rows, LANES)
        y2 = yf[: rows * LANES].reshape(rows, LANES)
        m2 = mf[: rows * LANES].reshape(rows, LANES)

    g_sum, l_sum = _partial_sums_pallas(x2, y2, m2, n_tiles, tile_rows, n_part)

    if n_covered != n_elem:
        # Ragged tail (< tile_rows*128 + 128 elements) handled in pure JAX so the
        # hot loop stays unmasked and never DMAs past the array end.
        tg, tl = _sums_from(n_covered)
        g_sum = g_sum + tg
        l_sum = l_sum + tl

    # L1Loss reduction='mean': both terms divide by the number of REAL elements.
    return (g_sum + l_sum) / jnp.float32(n_elem)


if __name__ == "__main__":
    key = jax.random.PRNGKey(0)
    k1, k2, k3 = jax.random.split(key, 3)

    shape = (2, 4, 16, 16)  # NCHW
    inp = jax.random.normal(k1, shape, dtype=jnp.float32)
    gt = jax.random.normal(k2, shape, dtype=jnp.float32)
    mask = (jax.random.uniform(k3, shape) > 0.5).astype(jnp.float32)

    loss = global_local_l1_loss(inp, gt, mask)
    loss = jax.block_until_ready(loss)

    # Reference (mirrors nn.L1Loss mean reduction).
    ref = jnp.mean(jnp.abs(inp - gt)) + jnp.mean(jnp.abs(inp * mask - gt * mask))
    assert jnp.allclose(loss, ref, rtol=1e-5, atol=1e-6), (loss, ref)

    print("KERNEL_OK")
</pallas_src>

<mosaic_0001>
module attributes {stable_mosaic.version = 11 : i64} {
  func.func @kernel(%arg0: i32, %arg1: i32, %arg2: memref<16x128xf32, #tpu.memory_space<vmem>>, %arg3: memref<16x128xf32, #tpu.memory_space<vmem>>, %arg4: memref<16x128xf32, #tpu.memory_space<vmem>>, %arg5: memref<1x128xf32, #tpu.memory_space<vmem>>, %arg6: memref<1x128xf32, #tpu.memory_space<vmem>>, %arg7: memref<8x128xf32, #tpu.memory_space<vmem>>, %arg8: memref<8x128xf32, #tpu.memory_space<vmem>>) attributes {dimension_semantics = [#tpu.dimension_semantics<parallel>, #tpu.dimension_semantics<arbitrary>], iteration_bounds = array<i64: 1, 1>, scalar_prefetch = 0 : i64, scratch_operands = 2 : i64, tpu.core_type = #tpu.core_type<tc>, window_params = [{transform_indices = @transform_0, window_bounds = array<i64: 16, 128>}, {transform_indices = @transform_1, window_bounds = array<i64: 16, 128>}, {transform_indices = @transform_2, window_bounds = array<i64: 16, 128>}, {transform_indices = @transform_3, window_bounds = array<i64: 1, 128>}, {transform_indices = @transform_4, window_bounds = array<i64: 1, 128>}]} {
    %c0_i32 = arith.constant 0 : i32
    %0 = arith.cmpi eq, %arg1, %c0_i32 : i32
    %1 = arith.extui %0 : i1 to i32
    %c0_i32_0 = arith.constant 0 : i32
    %2 = arith.cmpi ne, %1, %c0_i32_0 : i32
    scf.if %2 {
      %cst_17 = arith.constant 0.000000e+00 : f32
      %23 = vector.broadcast %cst_17 : f32 to vector<8x128xf32>
      %c0_18 = arith.constant 0 : index
      %c0_19 = arith.constant 0 : index
      %24 = vector.load %arg7[%c0_18, %c0_19] : memref<8x128xf32, #tpu.memory_space<vmem>>, vector<8x128xf32>
      tpu.vector_store %arg7[%c0_18, %c0_19], %23 {strides = array<i32>} : memref<8x128xf32, #tpu.memory_space<vmem>>, vector<8x128xf32>,
      %cst_20 = arith.constant 0.000000e+00 : f32
      %25 = vector.broadcast %cst_20 : f32 to vector<8x128xf32>
      %c0_21 = arith.constant 0 : index
      %c0_22 = arith.constant 0 : index
      %26 = vector.load %arg8[%c0_21, %c0_22] : memref<8x128xf32, #tpu.memory_space<vmem>>, vector<8x128xf32>
      tpu.vector_store %arg8[%c0_21, %c0_22], %25 {strides = array<i32>} : memref<8x128xf32, #tpu.memory_space<vmem>>, vector<8x128xf32>,
    } else {
    }
    %c0 = arith.constant 0 : index
    %c0_1 = arith.constant 0 : index
    %3 = vector.load %arg2[%c0, %c0_1] : memref<16x128xf32, #tpu.memory_space<vmem>>, vector<16x128xf32>
    %c0_2 = arith.constant 0 : index
    %c0_3 = arith.constant 0 : index
    %4 = vector.load %arg3[%c0_2, %c0_3] : memref<16x128xf32, #tpu.memory_space<vmem>>, vector<16x128xf32>
    %c0_4 = arith.constant 0 : index
    %c0_5 = arith.constant 0 : index
    %5 = vector.load %arg4[%c0_4, %c0_5] : memref<16x128xf32, #tpu.memory_space<vmem>>, vector<16x128xf32>
    %6 = arith.subf %3, %4 : vector<16x128xf32>
    %7 = math.absf %6 : vector<16x128xf32>
    %8 = math.absf %5 : vector<16x128xf32>
    %9 = arith.mulf %8, %7 : vector<16x128xf32>
    %c0_6 = arith.constant 0 : index
    %c0_7 = arith.constant 0 : index
    %10 = vector.load %arg7[%c0_6, %c0_7] : memref<8x128xf32, #tpu.memory_space<vmem>>, vector<8x128xf32>
    %11 = vector.shape_cast %7 : vector<16x128xf32> to vector<2x8x128xf32>
    %cst = arith.constant dense<0.000000e+00> : vector<8x128xf32>
    %12 = vector.multi_reduction <add>, %11, %cst [0] : vector<2x8x128xf32> to vector<8x128xf32>
    %13 = arith.addf %10, %12 : vector<8x128xf32>
    %c0_8 = arith.constant 0 : index
    %c0_9 = arith.constant 0 : index
    %14 = vector.load %arg7[%c0_8, %c0_9] : memref<8x128xf32, #tpu.memory_space<vmem>>, vector<8x128xf32>
    tpu.vector_store %arg7[%c0_8, %c0_9], %13 {strides = array<i32>} : memref<8x128xf32, #tpu.memory_space<vmem>>, vector<8x128xf32>,
    %c0_10 = arith.constant 0 : index
    %c0_11 = arith.constant 0 : index
    %15 = vector.load %arg8[%c0_10, %c0_11] : memref<8x128xf32, #tpu.memory_space<vmem>>, vector<8x128xf32>
    %16 = vector.shape_cast %9 : vector<16x128xf32> to vector<2x8x128xf32>
    %cst_12 = arith.constant dense<0.000000e+00> : vector<8x128xf32>
    %17 = vector.multi_reduction <add>, %16, %cst_12 [0] : vector<2x8x128xf32> to vector<8x128xf32>
    %18 = arith.addf %15, %17 : vector<8x128xf32>
    %c0_13 = arith.constant 0 : index
    %c0_14 = arith.constant 0 : index
    %19 = vector.load %arg8[%c0_13, %c0_14] : memref<8x128xf32, #tpu.memory_space<vmem>>, vector<8x128xf32>
    tpu.vector_store %arg8[%c0_13, %c0_14], %18 {strides = array<i32>} : memref<8x128xf32, #tpu.memory_space<vmem>>, vector<8x128xf32>,
    %c0_i32_15 = arith.constant 0 : i32
    %20 = arith.cmpi eq, %arg1, %c0_i32_15 : i32
    %21 = arith.extui %20 : i1 to i32
    %c0_i32_16 = arith.constant 0 : i32
    %22 = arith.cmpi ne, %21, %c0_i32_16 : i32
    scf.if %22 {
      %c0_17 = arith.constant 0 : index
      %c0_18 = arith.constant 0 : index
      %23 = vector.load %arg7[%c0_17, %c0_18] : memref<8x128xf32, #tpu.memory_space<vmem>>, vector<8x128xf32>
      %cst_19 = arith.constant dense<0.000000e+00> : vector<128xf32>
      %24 = vector.multi_reduction <add>, %23, %cst_19 [0] : vector<8x128xf32> to vector<128xf32>
      %25 = vector.shape_cast %24 : vector<128xf32> to vector<1x128xf32>
      %c0_20 = arith.constant 0 : index
      %c0_21 = arith.constant 0 : index
      %26 = vector.load %arg5[%c0_20, %c0_21] : memref<1x128xf32, #tpu.memory_space<vmem>>, vector<1x128xf32>
      tpu.vector_store %arg5[%c0_20, %c0_21], %25 {strides = array<i32>} : memref<1x128xf32, #tpu.memory_space<vmem>>, vector<1x128xf32>,
      %c0_22 = arith.constant 0 : index
      %c0_23 = arith.constant 0 : index
      %27 = vector.load %arg8[%c0_22, %c0_23] : memref<8x128xf32, #tpu.memory_space<vmem>>, vector<8x128xf32>
      %cst_24 = arith.constant dense<0.000000e+00> : vector<128xf32>
      %28 = vector.multi_reduction <add>, %27, %cst_24 [0] : vector<8x128xf32> to vector<128xf32>
      %29 = vector.shape_cast %28 : vector<128xf32> to vector<1x128xf32>
      %c0_25 = arith.constant 0 : index
      %c0_26 = arith.constant 0 : index
      %30 = vector.load %arg6[%c0_25, %c0_26] : memref<1x128xf32, #tpu.memory_space<vmem>>, vector<1x128xf32>
      tpu.vector_store %arg6[%c0_25, %c0_26], %29 {strides = array<i32>} : memref<1x128xf32, #tpu.memory_space<vmem>>, vector<1x128xf32>,
    } else {
    }
    return
  }
  func.func @transform_0(%arg0: i32, %arg1: i32) -> (i32, i32) {
    %c1_i32 = arith.constant 1 : i32
    %0 = arith.muli %arg0, %c1_i32 : i32
    %1 = arith.addi %0, %arg1 : i32
    %c0_i32 = arith.constant 0 : i32
    %c0_i32_0 = arith.constant 0 : i32
    return %1, %c0_i32 : i32, i32
  }
  func.func @transform_1(%arg0: i32, %arg1: i32) -> (i32, i32) {
    %c1_i32 = arith.constant 1 : i32
    %0 = arith.muli %arg0, %c1_i32 : i32
    %1 = arith.addi %0, %arg1 : i32
    %c0_i32 = arith.constant 0 : i32
    %c0_i32_0 = arith.constant 0 : i32
    return %1, %c0_i32 : i32, i32
  }
  func.func @transform_2(%arg0: i32, %arg1: i32) -> (i32, i32) {
    %c1_i32 = arith.constant 1 : i32
    %0 = arith.muli %arg0, %c1_i32 : i32
    %1 = arith.addi %0, %arg1 : i32
    %c0_i32 = arith.constant 0 : i32
    %c0_i32_0 = arith.constant 0 : i32
    return %1, %c0_i32 : i32, i32
  }
  func.func @transform_3(%arg0: i32, %arg1: i32) -> (i32, i32) {
    %c0_i32 = arith.constant 0 : i32
    %c0_i32_0 = arith.constant 0 : i32
    return %arg0, %c0_i32 : i32, i32
  }
  func.func @transform_4(%arg0: i32, %arg1: i32) -> (i32, i32) {
    %c0_i32 = arith.constant 0 : i32
    %c0_i32_0 = arith.constant 0 : i32
    return %arg0, %c0_i32 : i32, i32
  }
}

</mosaic_0001>

<bundles_post_ra>
// kernel: global_local_l1_loss.1
= control target key start
LH: loop header
LB: loop body
LE: loop exit
PB: predicated region body
PF: predicated region fallthrough
CT: control target
= control target key end

     0   :  { %s204_s0 = inlined_call_operand.vmem [shape: f32[16,128], index: 0, kind: input, shape index: {}]   ;;  %s205_s1 = inlined_call_operand.vmem [shape: f32[16,128], index: 1, kind: input, shape index: {}]   ;;  %s206_s2 = inlined_call_operand.vmem [shape: f32[16,128], index: 2, kind: input, shape index: {}]   ;;  %s207_s3 = inlined_call_operand.vmem [shape: f32[1,128], index: 3, kind: output, shape index: {0}]   ;;  %s208_s4 = inlined_call_operand.vmem [shape: f32[1,128], index: 4, kind: output, shape index: {1}]  }
   0x1   :  { %v88_v0 = vld [vmem:[%s204_s0] sm:$0xff]  ;;  %v89_v1 = vld [vmem:[%s204_s0 + $0x8] sm:$0xff] }
   0x2   :  { %v90_v2 = vld [vmem:[%s205_s1] sm:$0xff]  ;;  %v91_v3 = vld [vmem:[%s205_s1 + $0x8] sm:$0xff] }
   0x3   :  { %v94_v4 = vsub.f32 %v88_v0, %v90_v2  ;;  %v92_v5 = vld [vmem:[%s206_s2] sm:$0xff]  ;;  %v93_v6 = vld [vmem:[%s206_s2 + $0x8] sm:$0xff]  ;;  %v95_v7 = vsub.f32 %v89_v1, %v91_v3 }
   0x4   :  { %v98_v8 = vand.u32 2147483647, %v92_v5  ;;  %v99_v9 = vand.u32 2147483647, %v93_v6 }
   0x5   :  { %v96_v10 = vand.u32 2147483647, %v94_v4  ;;  %v97_v11 = vand.u32 2147483647, %v95_v7 }
   0x7   :  { %v100_v12 = vmul.f32 %v98_v8, %v96_v10  ;;  %v103_v13 = vadd.f32 %v97_v11, %v96_v10  ;;  %v101_v14 = vmul.f32 %v99_v9, %v97_v11 }
   0x9   :  { %v114_v15 = vrot.slane %v103_v13, 4  ;;  %v107_v16 = vadd.f32 %v101_v14, %v100_v12 }
   0xb   :  { %v115_v17 = vadd.f32 %v114_v15, %v103_v13  ;;  %v122_v18 = vrot.slane %v107_v16, 4 }
   0xd   :  { %v116_v19 = vrot.slane %v115_v17, 2  ;;  %v123_v20 = vadd.f32 %v122_v18, %v107_v16 }
   0xf   :  { %v117_v21 = vadd.f32 %v116_v19, %v115_v17  ;;  %v124_v22 = vrot.slane %v123_v20, 2 }
  0x11   :  { %v118_v23 = vrot.slane %v117_v21, 1  ;;  %v125_v24 = vadd.f32 %v124_v22, %v123_v20 }
  0x13   :  { %v119_v25 = vadd.f32 %v118_v23, %v117_v21  ;;  %v126_v26 = vrot.slane %v125_v24, 1 }
  0x15   :  { %120 = vst [vmem:[%s207_s3] sm:$0x1] %v119_v25  ;;  %v127_v27 = vadd.f32 %v126_v26, %v125_v24 }
  0x17   :  { %128 = vst [vmem:[%s208_s4] sm:$0x1] %v127_v27 }

</bundles_post_ra>
